<compile_context>
chip_gen: v5e
topology: v5e:2x2
jax: 0.10.0
libtpu: 0.0.40
codegen_flags: <defaults>
</compile_context>

<pallas_src>
import functools
import math

import jax
import jax.numpy as jnp
from jax.experimental import pallas as pl
from jax.experimental.pallas import tpu as pltpu


# ---------------------------------------------------------------------------
# Stage 1: fused Q/K/V projection (bf16 MXU operands, f32 accumulation).
# ---------------------------------------------------------------------------
def _make_qkv_proj_kernel(scale):
    def kernel(x_ref, wq_ref, wk_ref, wv_ref, bq_ref, bk_ref, bv_ref,
               q_ref, k_ref, v_ref):
        x = x_ref[...].astype(jnp.bfloat16)
        q = jnp.dot(x, wq_ref[...], preferred_element_type=jnp.float32) + bq_ref[...]
        k = jnp.dot(x, wk_ref[...], preferred_element_type=jnp.float32) + bk_ref[...]
        v = jnp.dot(x, wv_ref[...], preferred_element_type=jnp.float32) + bv_ref[...]
        # Fold the 1/sqrt(Dh) softmax scale into Q (scales S*D, not S*S).
        q_ref[...] = (q * scale).astype(q_ref.dtype)
        k_ref[...] = k.astype(k_ref.dtype)
        v_ref[...] = v.astype(v_ref.dtype)

    return kernel


# ---------------------------------------------------------------------------
# Stage 2: flash attention (all heads per grid step) + fused output projection.
# Grid: (batch, q_tiles, kv_tiles); the KV axis is the reduction axis.
# ---------------------------------------------------------------------------
def _make_flash_attn_out_kernel(num_heads, head_dim):
    def kernel(q_ref, k_ref, v_ref, wo_ref, bo_ref, o_ref, m_sc, l_sc, ctx_sc):
        ki = pl.program_id(2)
        nk = pl.num_programs(2)

        @pl.when(ki == 0)
        def _init():
            m_sc[...] = jnp.full(m_sc.shape, -jnp.inf, dtype=m_sc.dtype)
            l_sc[...] = jnp.zeros(l_sc.shape, l_sc.dtype)
            ctx_sc[...] = jnp.zeros(ctx_sc.shape, ctx_sc.dtype)

        q = q_ref[...]   # (tq, D) bf16, pre-scaled by 1/sqrt(Dh)
        k = k_ref[...]   # (tk, D) bf16
        v = v_ref[...]   # (tk, D) bf16

        # Static (unrolled) loop over heads: all heads handled in one grid
        # step; head columns are STATIC lane slices of the (.., D) tiles.
        # NOTE: for Dh < 128 the per-head score matmuls underfill MXU lanes
        # (inherent to per-head attention; see TODO about head packing).
        for h in range(num_heads):
            cs = slice(h * head_dim, (h + 1) * head_dim)
            # scores (tq, tk): contract the last (head) dims directly - no k.T.
            s = jax.lax.dot_general(
                q[:, cs], k[:, cs],
                dimension_numbers=(((1,), (1,)), ((), ())),
                preferred_element_type=jnp.float32)

            # Online (flash) softmax update; statistics kept in f32
            # (v5e has no bf16 EUP, and f32 keeps accuracy tight).
            m_prev = m_sc[:, h:h + 1]                               # (tq, 1)
            m_new = jnp.maximum(m_prev, jnp.max(s, axis=-1, keepdims=True))
            alpha = jnp.exp(m_prev - m_new)
            p = jnp.exp(s - m_new)
            l_sc[:, h:h + 1] = alpha * l_sc[:, h:h + 1] + jnp.sum(
                p, axis=-1, keepdims=True)
            ctx_sc[:, cs] = alpha * ctx_sc[:, cs] + jnp.dot(
                p.astype(jnp.bfloat16), v[:, cs],
                preferred_element_type=jnp.float32)
            m_sc[:, h:h + 1] = m_new

        @pl.when(ki == nk - 1)
        def _finish():
            # Normalize each head with the EUP approximate reciprocal
            # (off the VALU), then do ONE (tq, D) @ (D, D) output-projection
            # matmul against the resident Wo, and a single lane-dense store.
            for h in range(num_heads):
                cs = slice(h * head_dim, (h + 1) * head_dim)
                inv_l = pl.reciprocal(l_sc[:, h:h + 1], approx=True)
                ctx_sc[:, cs] = ctx_sc[:, cs] * inv_l
            ctx = ctx_sc[...].astype(jnp.bfloat16)                   # (tq, D)
            out = jnp.dot(ctx, wo_ref[...], preferred_element_type=jnp.float32)
            o_ref[...] = (out + bo_ref[...]).astype(o_ref.dtype)

    return kernel


# ---------------------------------------------------------------------------
# Helpers.
# ---------------------------------------------------------------------------
def _round_up(x, m):
    return ((x + m - 1) // m) * m


def _pick_tile(n, target, mult=8):
    """Largest divisor of n <= target, preferring multiples of `mult`.

    If n <= target the full dimension is used (allowed: block == full dim).
    """
    if n <= target:
        return n
    best = None
    t = target
    while t >= 1:
        if n % t == 0:
            if t % mult == 0:
                return t
            if best is None:
                best = t
        t -= 1
    return best if best is not None else n


def _phys_vmem_bytes():
    """Physical per-core VMEM (128 MiB on v5e/v6e, 64 MiB on v7x)."""
    try:
        info = pltpu.get_tpu_info()
        cap = int(getattr(info, "vmem_capacity_bytes", 0) or 0)
        if cap > 0:
            return cap
    except Exception:
        pass
    return 64 * 2**20  # conservative lower bound (v7x)


def _vmem_limit(estimate_bytes):
    # Never below the 32 MiB default; always leave ~8 MiB of headroom below
    # the physical capacity for Mosaic internal scratch.
    cap = max(32 * 2**20, _phys_vmem_bytes() - 8 * 2**20)
    want = max(32 * 2**20, int(1.25 * estimate_bytes))
    return int(min(cap, want))


# ---------------------------------------------------------------------------
# Wrapper.
# ---------------------------------------------------------------------------
def multihead_attention(x, wq, bq, wk, bk, wv, bv, wo, bo, *, num_heads):
    B, S, D = x.shape
    assert D % num_heads == 0
    Dh = D // num_heads
    scale = 1.0 / math.sqrt(Dh)
    out_dtype = x.dtype

    # ---------------- stage 1: fused Q/K/V projection -----------------------
    BS = B * S
    tr = _pick_tile(BS, 1024, 8)
    x2 = x.reshape(BS, D)
    wq_b, wk_b, wv_b = (w.astype(jnp.bfloat16) for w in (wq, wk, wv))

    row_spec = pl.BlockSpec((tr, D), lambda i: (i, 0))
    # Grid-invariant operands: constant index_map => DMA'd once, kept resident.
    w_spec = pl.BlockSpec((D, D), lambda i: (0, 0))
    b_spec = pl.BlockSpec((1, D), lambda i: (0, 0))

    qkv_est = (
        2 * tr * D * 4                       # x row tile (f32, double buffered)
        + tr * D * 2                         # bf16 copy of x
        + 3 * 2 * D * D * 2                  # Wq/Wk/Wv (bf16)
        + 3 * 2 * _round_up(1, 8) * D * 4    # biases
        + 3 * 2 * tr * D * 2                 # Q/K/V output tiles (bf16)
        + 3 * tr * D * 4                     # f32 matmul results before cast
    )
    q2, k2, v2 = pl.pallas_call(
        _make_qkv_proj_kernel(scale),
        out_shape=[jax.ShapeDtypeStruct((BS, D), jnp.bfloat16)] * 3,
        grid_spec=pltpu.PrefetchScalarGridSpec(
            num_scalar_prefetch=0,
            grid=(BS // tr,),
            in_specs=[row_spec, w_spec, w_spec, w_spec, b_spec, b_spec, b_spec],
            out_specs=[row_spec, row_spec, row_spec],
        ),
        compiler_params=pltpu.CompilerParams(
            dimension_semantics=("parallel",),
            vmem_limit_bytes=_vmem_limit(qkv_est)),
    )(x2, wq_b, wk_b, wv_b, bq, bk, bv)

    # Free reshapes back to (B, S, D). Heads are split in-kernel with static
    # lane slices -> no wrapper-side transpose (no extra HBM round trip).
    q3 = q2.reshape(B, S, D)
    k3 = k2.reshape(B, S, D)
    v3 = v2.reshape(B, S, D)
    wo_b = wo.astype(jnp.bfloat16)

    # -------------- stage 2: flash attention + output projection ------------
    tq = _pick_tile(S, 512, 16)    # sublane-friendly (bf16 pack)
    tk = _pick_tile(S, 512, 128)   # lane dim of the (tq, tk) score tiles

    q_spec = pl.BlockSpec((None, tq, D), lambda b, qi, ki: (b, qi, 0))
    kv_spec = pl.BlockSpec((None, tk, D), lambda b, qi, ki: (b, ki, 0))
    wo_spec = pl.BlockSpec((D, D), lambda b, qi, ki: (0, 0))     # resident Wo
    bo_spec = pl.BlockSpec((1, D), lambda b, qi, ki: (0, 0))
    o_spec = pl.BlockSpec((None, tq, D), lambda b, qi, ki: (b, qi, 0))

    attn_est = (
        2 * tq * D * 2                                    # Q tile
        + 2 * 2 * tk * D * 2                              # K and V tiles
        + 2 * D * D * 2                                   # Wo
        + 2 * _round_up(1, 8) * D * 4                     # bo
        + 2 * tq * D * jnp.dtype(out_dtype).itemsize      # output tile
        + 2 * tq * _round_up(num_heads, 128) * 4          # m, l scratches
        + tq * _round_up(D, 128) * 4                      # ctx scratch
        + 2 * tq * tk * 4 + tq * tk * 2                   # s / p intermediates
        + tq * D * 2 + tq * D * 4                         # ctx bf16 + out f32
    )
    out = pl.pallas_call(
        _make_flash_attn_out_kernel(num_heads, Dh),
        out_shape=jax.ShapeDtypeStruct((B, S, D), out_dtype),
        grid_spec=pltpu.PrefetchScalarGridSpec(
            num_scalar_prefetch=0,
            grid=(B, S // tq, S // tk),
            in_specs=[q_spec, kv_spec, kv_spec, wo_spec, bo_spec],
            out_specs=o_spec,
            scratch_shapes=[
                pltpu.VMEM((tq, num_heads), jnp.float32),  # running max (per head)
                pltpu.VMEM((tq, num_heads), jnp.float32),  # running denom (per head)
                pltpu.VMEM((tq, D), jnp.float32),          # context accumulator
            ],
        ),
        compiler_params=pltpu.CompilerParams(
            # (B, S//tq) are the parallel axes -> both v7x TensorCores get
            # work as long as their product >= 2; the KV axis accumulates.
            dimension_semantics=("parallel", "parallel", "arbitrary"),
            vmem_limit_bytes=_vmem_limit(attn_est)),
    )(q3, k3, v3, wo_b, bo)
    return out


# ---------------------------------------------------------------------------
# Pure-JAX reference (f32) matching the PyTorch module semantics.
# ---------------------------------------------------------------------------
def reference_mha(x, wq, bq, wk, bk, wv, bv, wo, bo, *, num_heads):
    B, S, D = x.shape
    Dh = D // num_heads
    q = (x @ wq + bq).reshape(B, S, num_heads, Dh).transpose(0, 2, 1, 3)
    k = (x @ wk + bk).reshape(B, S, num_heads, Dh).transpose(0, 2, 1, 3)
    v = (x @ wv + bv).reshape(B, S, num_heads, Dh).transpose(0, 2, 1, 3)
    scores = jnp.einsum('bhqd,bhkd->bhqk', q, k) / math.sqrt(Dh)
    probs = jax.nn.softmax(scores, axis=-1)
    ctx = jnp.einsum('bhqk,bhkd->bhqd', probs, v)
    ctx = ctx.transpose(0, 2, 1, 3).reshape(B, S, D)
    return ctx @ wo + bo


if __name__ == "__main__":
    # Small shapes consistent with the module's forward: (batch, seq, input_dim)
    B, S, D = 2, 8, 32
    num_heads = 4

    key = jax.random.PRNGKey(0)
    keys = jax.random.split(key, 9)
    x = jax.random.normal(keys[0], (B, S, D), dtype=jnp.float32)

    init = 1.0 / math.sqrt(D)
    wq = jax.random.uniform(keys[1], (D, D), jnp.float32, -init, init)
    wk = jax.random.uniform(keys[2], (D, D), jnp.float32, -init, init)
    wv = jax.random.uniform(keys[3], (D, D), jnp.float32, -init, init)
    wo = jax.random.uniform(keys[4], (D, D), jnp.float32, -init, init)
    bq = jax.random.uniform(keys[5], (1, D), jnp.float32, -init, init)
    bk = jax.random.uniform(keys[6], (1, D), jnp.float32, -init, init)
    bv = jax.random.uniform(keys[7], (1, D), jnp.float32, -init, init)
    bo = jax.random.uniform(keys[8], (1, D), jnp.float32, -init, init)

    mha = jax.jit(functools.partial(multihead_attention, num_heads=num_heads))
    out = jax.block_until_ready(mha(x, wq, bq, wk, bk, wv, bv, wo, bo))

    ref = reference_mha(x, wq, bq, wk, bk, wv, bv, wo, bo, num_heads=num_heads)
    assert out.shape == (B, S, D)
    # bf16 matmul operands + approx reciprocal => loosened tolerance vs f32 ref.
    assert jnp.allclose(out, ref, atol=5e-2, rtol=5e-2), "mismatch vs reference"

    print("KERNEL_OK")
</pallas_src>

<mosaic_0001>
module attributes {stable_mosaic.version = 11 : i64} {
  func.func @kernel(%arg0: i32, %arg1: memref<16x32xf32, #tpu.memory_space<vmem>>, %arg2: memref<32x32xbf16, #tpu.memory_space<vmem>>, %arg3: memref<32x32xbf16, #tpu.memory_space<vmem>>, %arg4: memref<32x32xbf16, #tpu.memory_space<vmem>>, %arg5: memref<1x32xf32, #tpu.memory_space<vmem>>, %arg6: memref<1x32xf32, #tpu.memory_space<vmem>>, %arg7: memref<1x32xf32, #tpu.memory_space<vmem>>, %arg8: memref<16x32xbf16, #tpu.memory_space<vmem>>, %arg9: memref<16x32xbf16, #tpu.memory_space<vmem>>, %arg10: memref<16x32xbf16, #tpu.memory_space<vmem>>) attributes {dimension_semantics = [#tpu.dimension_semantics<parallel>], iteration_bounds = array<i64: 1>, scalar_prefetch = 0 : i64, scratch_operands = 0 : i64, tpu.core_type = #tpu.core_type<tc>, window_params = [{transform_indices = @transform_0, window_bounds = array<i64: 16, 32>}, {pipeline_mode = #tpu.pipeline_mode<synchronous>, transform_indices = @transform_1, window_bounds = array<i64: 32, 32>}, {pipeline_mode = #tpu.pipeline_mode<synchronous>, transform_indices = @transform_2, window_bounds = array<i64: 32, 32>}, {pipeline_mode = #tpu.pipeline_mode<synchronous>, transform_indices = @transform_3, window_bounds = array<i64: 32, 32>}, {pipeline_mode = #tpu.pipeline_mode<synchronous>, transform_indices = @transform_4, window_bounds = array<i64: 1, 32>}, {pipeline_mode = #tpu.pipeline_mode<synchronous>, transform_indices = @transform_5, window_bounds = array<i64: 1, 32>}, {pipeline_mode = #tpu.pipeline_mode<synchronous>, transform_indices = @transform_6, window_bounds = array<i64: 1, 32>}, {transform_indices = @transform_7, window_bounds = array<i64: 16, 32>}, {transform_indices = @transform_8, window_bounds = array<i64: 16, 32>}, {transform_indices = @transform_9, window_bounds = array<i64: 16, 32>}]} {
    %c0 = arith.constant 0 : index
    %c0_0 = arith.constant 0 : index
    %0 = vector.load %arg1[%c0, %c0_0] : memref<16x32xf32, #tpu.memory_space<vmem>>, vector<16x32xf32>
    %1 = arith.truncf %0 : vector<16x32xf32> to vector<16x32xbf16>
    %c0_1 = arith.constant 0 : index
    %c0_2 = arith.constant 0 : index
    %2 = vector.load %arg2[%c0_1, %c0_2] : memref<32x32xbf16, #tpu.memory_space<vmem>>, vector<32x32xbf16>
    %cst = arith.constant dense<0.000000e+00> : vector<16x32xf32>
    %3 = tpu.matmul %1, %2, %cst {dimension_numbers = #tpu.dot_dimension_numbers<[1], [0], [0], [1], [0, 0, 1, 1], [], []>} : vector<16x32xbf16>, vector<32x32xbf16>, vector<16x32xf32> -> vector<16x32xf32>
    %c0_3 = arith.constant 0 : index
    %c0_4 = arith.constant 0 : index
    %4 = vector.load %arg5[%c0_3, %c0_4] : memref<1x32xf32, #tpu.memory_space<vmem>>, vector<1x32xf32>
    %5 = vector.broadcast %4 : vector<1x32xf32> to vector<16x32xf32>
    %6 = arith.addf %3, %5 : vector<16x32xf32>
    %c0_5 = arith.constant 0 : index
    %c0_6 = arith.constant 0 : index
    %7 = vector.load %arg3[%c0_5, %c0_6] : memref<32x32xbf16, #tpu.memory_space<vmem>>, vector<32x32xbf16>
    %cst_7 = arith.constant dense<0.000000e+00> : vector<16x32xf32>
    %8 = tpu.matmul %1, %7, %cst_7 {dimension_numbers = #tpu.dot_dimension_numbers<[1], [0], [0], [1], [0, 0, 1, 1], [], []>} : vector<16x32xbf16>, vector<32x32xbf16>, vector<16x32xf32> -> vector<16x32xf32>
    %c0_8 = arith.constant 0 : index
    %c0_9 = arith.constant 0 : index
    %9 = vector.load %arg6[%c0_8, %c0_9] : memref<1x32xf32, #tpu.memory_space<vmem>>, vector<1x32xf32>
    %10 = vector.broadcast %9 : vector<1x32xf32> to vector<16x32xf32>
    %11 = arith.addf %8, %10 : vector<16x32xf32>
    %c0_10 = arith.constant 0 : index
    %c0_11 = arith.constant 0 : index
    %12 = vector.load %arg4[%c0_10, %c0_11] : memref<32x32xbf16, #tpu.memory_space<vmem>>, vector<32x32xbf16>
    %cst_12 = arith.constant dense<0.000000e+00> : vector<16x32xf32>
    %13 = tpu.matmul %1, %12, %cst_12 {dimension_numbers = #tpu.dot_dimension_numbers<[1], [0], [0], [1], [0, 0, 1, 1], [], []>} : vector<16x32xbf16>, vector<32x32xbf16>, vector<16x32xf32> -> vector<16x32xf32>
    %c0_13 = arith.constant 0 : index
    %c0_14 = arith.constant 0 : index
    %14 = vector.load %arg7[%c0_13, %c0_14] : memref<1x32xf32, #tpu.memory_space<vmem>>, vector<1x32xf32>
    %15 = vector.broadcast %14 : vector<1x32xf32> to vector<16x32xf32>
    %16 = arith.addf %13, %15 : vector<16x32xf32>
    %cst_15 = arith.constant 0.353553385 : f32
    %17 = vector.broadcast %cst_15 : f32 to vector<16x32xf32>
    %18 = arith.mulf %6, %17 : vector<16x32xf32>
    %19 = arith.truncf %18 : vector<16x32xf32> to vector<16x32xbf16>
    %c0_16 = arith.constant 0 : index
    %c0_17 = arith.constant 0 : index
    %20 = vector.load %arg8[%c0_16, %c0_17] : memref<16x32xbf16, #tpu.memory_space<vmem>>, vector<16x32xbf16>
    tpu.vector_store %arg8[%c0_16, %c0_17], %19 {strides = array<i32>} : memref<16x32xbf16, #tpu.memory_space<vmem>>, vector<16x32xbf16>,
    %21 = arith.truncf %11 : vector<16x32xf32> to vector<16x32xbf16>
    %c0_18 = arith.constant 0 : index
    %c0_19 = arith.constant 0 : index
    %22 = vector.load %arg9[%c0_18, %c0_19] : memref<16x32xbf16, #tpu.memory_space<vmem>>, vector<16x32xbf16>
    tpu.vector_store %arg9[%c0_18, %c0_19], %21 {strides = array<i32>} : memref<16x32xbf16, #tpu.memory_space<vmem>>, vector<16x32xbf16>,
    %23 = arith.truncf %16 : vector<16x32xf32> to vector<16x32xbf16>
    %c0_20 = arith.constant 0 : index
    %c0_21 = arith.constant 0 : index
    %24 = vector.load %arg10[%c0_20, %c0_21] : memref<16x32xbf16, #tpu.memory_space<vmem>>, vector<16x32xbf16>
    tpu.vector_store %arg10[%c0_20, %c0_21], %23 {strides = array<i32>} : memref<16x32xbf16, #tpu.memory_space<vmem>>, vector<16x32xbf16>,
    return
  }
  func.func @transform_0(%arg0: i32) -> (i32, i32) {
    %c0_i32 = arith.constant 0 : i32
    %c0_i32_0 = arith.constant 0 : i32
    return %arg0, %c0_i32 : i32, i32
  }
  func.func @transform_1(%arg0: i32) -> (i32, i32) {
    %c0_i32 = arith.constant 0 : i32
    %c0_i32_0 = arith.constant 0 : i32
    %c0_i32_1 = arith.constant 0 : i32
    return %c0_i32, %c0_i32_0 : i32, i32
  }
  func.func @transform_2(%arg0: i32) -> (i32, i32) {
    %c0_i32 = arith.constant 0 : i32
    %c0_i32_0 = arith.constant 0 : i32
    %c0_i32_1 = arith.constant 0 : i32
    return %c0_i32, %c0_i32_0 : i32, i32
  }
  func.func @transform_3(%arg0: i32) -> (i32, i32) {
    %c0_i32 = arith.constant 0 : i32
    %c0_i32_0 = arith.constant 0 : i32
    %c0_i32_1 = arith.constant 0 : i32
    return %c0_i32, %c0_i32_0 : i32, i32
  }
  func.func @transform_4(%arg0: i32) -> (i32, i32) {
    %c0_i32 = arith.constant 0 : i32
    %c0_i32_0 = arith.constant 0 : i32
    %c0_i32_1 = arith.constant 0 : i32
    return %c0_i32, %c0_i32_0 : i32, i32
  }
  func.func @transform_5(%arg0: i32) -> (i32, i32) {
    %c0_i32 = arith.constant 0 : i32
    %c0_i32_0 = arith.constant 0 : i32
    %c0_i32_1 = arith.constant 0 : i32
    return %c0_i32, %c0_i32_0 : i32, i32
  }
  func.func @transform_6(%arg0: i32) -> (i32, i32) {
    %c0_i32 = arith.constant 0 : i32
    %c0_i32_0 = arith.constant 0 : i32
    %c0_i32_1 = arith.constant 0 : i32
    return %c0_i32, %c0_i32_0 : i32, i32
  }
  func.func @transform_7(%arg0: i32) -> (i32, i32) {
    %c0_i32 = arith.constant 0 : i32
    %c0_i32_0 = arith.constant 0 : i32
    return %arg0, %c0_i32 : i32, i32
  }
  func.func @transform_8(%arg0: i32) -> (i32, i32) {
    %c0_i32 = arith.constant 0 : i32
    %c0_i32_0 = arith.constant 0 : i32
    return %arg0, %c0_i32 : i32, i32
  }
  func.func @transform_9(%arg0: i32) -> (i32, i32) {
    %c0_i32 = arith.constant 0 : i32
    %c0_i32_0 = arith.constant 0 : i32
    return %arg0, %c0_i32 : i32, i32
  }
}

module attributes {stable_mosaic.version = 11 : i64} {
  func.func @kernel(%arg0: i32, %arg1: i32, %arg2: i32, %arg3: memref<1x8x32xbf16, #tpu.memory_space<vmem>>, %arg4: memref<1x8x32xbf16, #tpu.memory_space<vmem>>, %arg5: memref<1x8x32xbf16, #tpu.memory_space<vmem>>, %arg6: memref<32x32xbf16, #tpu.memory_space<vmem>>, %arg7: memref<1x32xf32, #tpu.memory_space<vmem>>, %arg8: memref<1x8x32xf32, #tpu.memory_space<vmem>>, %arg9: memref<8x4xf32, #tpu.memory_space<vmem>>, %arg10: memref<8x4xf32, #tpu.memory_space<vmem>>, %arg11: memref<8x32xf32, #tpu.memory_space<vmem>>) attributes {dimension_semantics = [#tpu.dimension_semantics<parallel>, #tpu.dimension_semantics<parallel>, #tpu.dimension_semantics<arbitrary>], iteration_bounds = array<i64: 2, 1, 1>, scalar_prefetch = 0 : i64, scratch_operands = 3 : i64, tpu.core_type = #tpu.core_type<tc>, window_params = [{transform_indices = @transform_0, window_bounds = array<i64: 1, 8, 32>}, {transform_indices = @transform_1, window_bounds = array<i64: 1, 8, 32>}, {transform_indices = @transform_2, window_bounds = array<i64: 1, 8, 32>}, {pipeline_mode = #tpu.pipeline_mode<synchronous>, transform_indices = @transform_3, window_bounds = array<i64: 32, 32>}, {pipeline_mode = #tpu.pipeline_mode<synchronous>, transform_indices = @transform_4, window_bounds = array<i64: 1, 32>}, {transform_indices = @transform_5, window_bounds = array<i64: 1, 8, 32>}]} {
    %c0_i32 = arith.constant 0 : i32
    %0 = arith.cmpi eq, %arg2, %c0_i32 : i32
    %1 = arith.extui %0 : i1 to i32
    %c0_i32_0 = arith.constant 0 : i32
    %2 = arith.cmpi ne, %1, %c0_i32_0 : i32
    scf.if %2 {
      %cst_68 = arith.constant 0xFF800000 : f32
      %120 = vector.broadcast %cst_68 : f32 to vector<8x4xf32>
      %c0_69 = arith.constant 0 : index
      %c0_70 = arith.constant 0 : index
      %121 = vector.load %arg9[%c0_69, %c0_70] : memref<8x4xf32, #tpu.memory_space<vmem>>, vector<8x4xf32>
      tpu.vector_store %arg9[%c0_69, %c0_70], %120 {strides = array<i32>} : memref<8x4xf32, #tpu.memory_space<vmem>>, vector<8x4xf32>,
      %cst_71 = arith.constant 0.000000e+00 : f32
      %122 = vector.broadcast %cst_71 : f32 to vector<8x4xf32>
      %c0_72 = arith.constant 0 : index
      %c0_73 = arith.constant 0 : index
      %123 = vector.load %arg10[%c0_72, %c0_73] : memref<8x4xf32, #tpu.memory_space<vmem>>, vector<8x4xf32>
      tpu.vector_store %arg10[%c0_72, %c0_73], %122 {strides = array<i32>} : memref<8x4xf32, #tpu.memory_space<vmem>>, vector<8x4xf32>,
      %cst_74 = arith.constant 0.000000e+00 : f32
      %124 = vector.broadcast %cst_74 : f32 to vector<8x32xf32>
      %c0_75 = arith.constant 0 : index
      %c0_76 = arith.constant 0 : index
      %125 = vector.load %arg11[%c0_75, %c0_76] : memref<8x32xf32, #tpu.memory_space<vmem>>, vector<8x32xf32>
      tpu.vector_store %arg11[%c0_75, %c0_76], %124 {strides = array<i32>} : memref<8x32xf32, #tpu.memory_space<vmem>>, vector<8x32xf32>,
    } else {
    }
    %c0 = arith.constant 0 : index
    %c0_1 = arith.constant 0 : index
    %c0_2 = arith.constant 0 : index
    %3 = vector.load %arg3[%c0, %c0_1, %c0_2] : memref<1x8x32xbf16, #tpu.memory_space<vmem>>, vector<1x8x32xbf16>
    %4 = vector.shape_cast %3 : vector<1x8x32xbf16> to vector<8x32xbf16>
    %c0_3 = arith.constant 0 : index
    %c0_4 = arith.constant 0 : index
    %c0_5 = arith.constant 0 : index
    %5 = vector.load %arg4[%c0_3, %c0_4, %c0_5] : memref<1x8x32xbf16, #tpu.memory_space<vmem>>, vector<1x8x32xbf16>
    %6 = vector.shape_cast %5 : vector<1x8x32xbf16> to vector<8x32xbf16>
    %c0_6 = arith.constant 0 : index
    %c0_7 = arith.constant 0 : index
    %c0_8 = arith.constant 0 : index
    %7 = vector.load %arg5[%c0_6, %c0_7, %c0_8] : memref<1x8x32xbf16, #tpu.memory_space<vmem>>, vector<1x8x32xbf16>
    %8 = vector.shape_cast %7 : vector<1x8x32xbf16> to vector<8x32xbf16>
    %9 = vector.extract_strided_slice %4 {offsets = [0, 0], sizes = [8, 8], strides = [1, 1]} : vector<8x32xbf16> to vector<8x8xbf16>
    %10 = vector.extract_strided_slice %6 {offsets = [0, 0], sizes = [8, 8], strides = [1, 1]} : vector<8x32xbf16> to vector<8x8xbf16>
    %cst = arith.constant dense<0.000000e+00> : vector<8x8xf32>
    %11 = tpu.matmul %9, %10, %cst {dimension_numbers = #tpu.dot_dimension_numbers<[1], [1], [0], [0], [0, 0, 1, 0], [], []>} : vector<8x8xbf16>, vector<8x8xbf16>, vector<8x8xf32> -> vector<8x8xf32>
    %c0_9 = arith.constant 0 : index
    %c0_10 = arith.constant 0 : index
    %12 = vector.load %arg9[%c0_9, %c0_10] : memref<8x4xf32, #tpu.memory_space<vmem>>, vector<8x1xf32>
    %cst_11 = arith.constant dense<0xFF800000> : vector<8xf32>
    %13 = vector.multi_reduction <maximumf>, %11, %cst_11 [1] : vector<8x8xf32> to vector<8xf32>
    %14 = vector.shape_cast %13 : vector<8xf32> to vector<8x1xf32>
    %15 = arith.maximumf %12, %14 : vector<8x1xf32>
    %16 = arith.subf %12, %15 : vector<8x1xf32>
    %17 = math.exp %16 : vector<8x1xf32>
    %18 = vector.broadcast %15 : vector<8x1xf32> to vector<8x8xf32>
    %19 = arith.subf %11, %18 : vector<8x8xf32>
    %20 = math.exp %19 : vector<8x8xf32>
    %c0_12 = arith.constant 0 : index
    %c0_13 = arith.constant 0 : index
    %21 = vector.load %arg10[%c0_12, %c0_13] : memref<8x4xf32, #tpu.memory_space<vmem>>, vector<8x1xf32>
    %22 = arith.mulf %17, %21 : vector<8x1xf32>
    %cst_14 = arith.constant dense<0.000000e+00> : vector<8xf32>
    %23 = vector.multi_reduction <add>, %20, %cst_14 [1] : vector<8x8xf32> to vector<8xf32>
    %24 = vector.shape_cast %23 : vector<8xf32> to vector<8x1xf32>
    %25 = arith.addf %22, %24 : vector<8x1xf32>
    %c0_15 = arith.constant 0 : index
    %c0_16 = arith.constant 0 : index
    %26 = vector.load %arg10[%c0_15, %c0_16] : memref<8x4xf32, #tpu.memory_space<vmem>>, vector<8x1xf32>
    tpu.vector_store %arg10[%c0_15, %c0_16], %25 {strides = array<i32>} : memref<8x4xf32, #tpu.memory_space<vmem>>, vector<8x1xf32>,
    %c0_17 = arith.constant 0 : index
    %c0_18 = arith.constant 0 : index
    %27 = vector.load %arg11[%c0_17, %c0_18] : memref<8x32xf32, #tpu.memory_space<vmem>>, vector<8x8xf32>
    %28 = vector.broadcast %17 : vector<8x1xf32> to vector<8x8xf32>
    %29 = arith.mulf %28, %27 : vector<8x8xf32>
    %30 = arith.truncf %20 : vector<8x8xf32> to vector<8x8xbf16>
    %31 = vector.extract_strided_slice %8 {offsets = [0, 0], sizes = [8, 8], strides = [1, 1]} : vector<8x32xbf16> to vector<8x8xbf16>
    %cst_19 = arith.constant dense<0.000000e+00> : vector<8x8xf32>
    %32 = tpu.matmul %30, %31, %cst_19 {dimension_numbers = #tpu.dot_dimension_numbers<[1], [0], [0], [1], [0, 0, 1, 1], [], []>} : vector<8x8xbf16>, vector<8x8xbf16>, vector<8x8xf32> -> vector<8x8xf32>
    %33 = arith.addf %29, %32 : vector<8x8xf32>
    %c0_20 = arith.constant 0 : index
    %c0_21 = arith.constant 0 : index
    %34 = vector.load %arg11[%c0_20, %c0_21] : memref<8x32xf32, #tpu.memory_space<vmem>>, vector<8x8xf32>
    tpu.vector_store %arg11[%c0_20, %c0_21], %33 {strides = array<i32>} : memref<8x32xf32, #tpu.memory_space<vmem>>, vector<8x8xf32>,
    %c0_22 = arith.constant 0 : index
    %c0_23 = arith.constant 0 : index
    %35 = vector.load %arg9[%c0_22, %c0_23] : memref<8x4xf32, #tpu.memory_space<vmem>>, vector<8x1xf32>
    tpu.vector_store %arg9[%c0_22, %c0_23], %15 {strides = array<i32>} : memref<8x4xf32, #tpu.memory_space<vmem>>, vector<8x1xf32>,
    %36 = vector.extract_strided_slice %4 {offsets = [0, 8], sizes = [8, 8], strides = [1, 1]} : vector<8x32xbf16> to vector<8x8xbf16>
    %37 = vector.extract_strided_slice %6 {offsets = [0, 8], sizes = [8, 8], strides = [1, 1]} : vector<8x32xbf16> to vector<8x8xbf16>
    %cst_24 = arith.constant dense<0.000000e+00> : vector<8x8xf32>
    %38 = tpu.matmul %36, %37, %cst_24 {dimension_numbers = #tpu.dot_dimension_numbers<[1], [1], [0], [0], [0, 0, 1, 0], [], []>} : vector<8x8xbf16>, vector<8x8xbf16>, vector<8x8xf32> -> vector<8x8xf32>
    %c0_25 = arith.constant 0 : index
    %c1 = arith.constant 1 : index
    %39 = vector.load %arg9[%c0_25, %c1] : memref<8x4xf32, #tpu.memory_space<vmem>>, vector<8x1xf32>
    %cst_26 = arith.constant dense<0xFF800000> : vector<8xf32>
    %40 = vector.multi_reduction <maximumf>, %38, %cst_26 [1] : vector<8x8xf32> to vector<8xf32>
    %41 = vector.shape_cast %40 : vector<8xf32> to vector<8x1xf32>
    %42 = arith.maximumf %39, %41 : vector<8x1xf32>
    %43 = arith.subf %39, %42 : vector<8x1xf32>
    %44 = math.exp %43 : vector<8x1xf32>
    %45 = vector.broadcast %42 : vector<8x1xf32> to vector<8x8xf32>
    %46 = arith.subf %38, %45 : vector<8x8xf32>
    %47 = math.exp %46 : vector<8x8xf32>
    %c0_27 = arith.constant 0 : index
    %c1_28 = arith.constant 1 : index
    %48 = vector.load %arg10[%c0_27, %c1_28] : memref<8x4xf32, #tpu.memory_space<vmem>>, vector<8x1xf32>
    %49 = arith.mulf %44, %48 : vector<8x1xf32>
    %cst_29 = arith.constant dense<0.000000e+00> : vector<8xf32>
    %50 = vector.multi_reduction <add>, %47, %cst_29 [1] : vector<8x8xf32> to vector<8xf32>
    %51 = vector.shape_cast %50 : vector<8xf32> to vector<8x1xf32>
    %52 = arith.addf %49, %51 : vector<8x1xf32>
    %c0_30 = arith.constant 0 : index
    %c1_31 = arith.constant 1 : index
    %53 = vector.load %arg10[%c0_30, %c1_31] : memref<8x4xf32, #tpu.memory_space<vmem>>, vector<8x1xf32>
    tpu.vector_store %arg10[%c0_30, %c1_31], %52 {strides = array<i32>} : memref<8x4xf32, #tpu.memory_space<vmem>>, vector<8x1xf32>,
    %c0_32 = arith.constant 0 : index
    %c8 = arith.constant 8 : index
    %54 = vector.load %arg11[%c0_32, %c8] : memref<8x32xf32, #tpu.memory_space<vmem>>, vector<8x8xf32>
    %55 = vector.broadcast %44 : vector<8x1xf32> to vector<8x8xf32>
    %56 = arith.mulf %55, %54 : vector<8x8xf32>
    %57 = arith.truncf %47 : vector<8x8xf32> to vector<8x8xbf16>
    %58 = vector.extract_strided_slice %8 {offsets = [0, 8], sizes = [8, 8], strides = [1, 1]} : vector<8x32xbf16> to vector<8x8xbf16>
    %cst_33 = arith.constant dense<0.000000e+00> : vector<8x8xf32>
    %59 = tpu.matmul %57, %58, %cst_33 {dimension_numbers = #tpu.dot_dimension_numbers<[1], [0], [0], [1], [0, 0, 1, 1], [], []>} : vector<8x8xbf16>, vector<8x8xbf16>, vector<8x8xf32> -> vector<8x8xf32>
    %60 = arith.addf %56, %59 : vector<8x8xf32>
    %c0_34 = arith.constant 0 : index
    %c8_35 = arith.constant 8 : index
    %61 = vector.load %arg11[%c0_34, %c8_35] : memref<8x32xf32, #tpu.memory_space<vmem>>, vector<8x8xf32>
    tpu.vector_store %arg11[%c0_34, %c8_35], %60 {strides = array<i32>} : memref<8x32xf32, #tpu.memory_space<vmem>>, vector<8x8xf32>,
    %c0_36 = arith.constant 0 : index
    %c1_37 = arith.constant 1 : index
    %62 = vector.load %arg9[%c0_36, %c1_37] : memref<8x4xf32, #tpu.memory_space<vmem>>, vector<8x1xf32>
    tpu.vector_store %arg9[%c0_36, %c1_37], %42 {strides = array<i32>} : memref<8x4xf32, #tpu.memory_space<vmem>>, vector<8x1xf32>,
    %63 = vector.extract_strided_slice %4 {offsets = [0, 16], sizes = [8, 8], strides = [1, 1]} : vector<8x32xbf16> to vector<8x8xbf16>
    %64 = vector.extract_strided_slice %6 {offsets = [0, 16], sizes = [8, 8], strides = [1, 1]} : vector<8x32xbf16> to vector<8x8xbf16>
    %cst_38 = arith.constant dense<0.000000e+00> : vector<8x8xf32>
    %65 = tpu.matmul %63, %64, %cst_38 {dimension_numbers = #tpu.dot_dimension_numbers<[1], [1], [0], [0], [0, 0, 1, 0], [], []>} : vector<8x8xbf16>, vector<8x8xbf16>, vector<8x8xf32> -> vector<8x8xf32>
    %c0_39 = arith.constant 0 : index
    %c2 = arith.constant 2 : index
    %66 = vector.load %arg9[%c0_39, %c2] : memref<8x4xf32, #tpu.memory_space<vmem>>, vector<8x1xf32>
    %cst_40 = arith.constant dense<0xFF800000> : vector<8xf32>
    %67 = vector.multi_reduction <maximumf>, %65, %cst_40 [1] : vector<8x8xf32> to vector<8xf32>
    %68 = vector.shape_cast %67 : vector<8xf32> to vector<8x1xf32>
    %69 = arith.maximumf %66, %68 : vector<8x1xf32>
    %70 = arith.subf %66, %69 : vector<8x1xf32>
    %71 = math.exp %70 : vector<8x1xf32>
    %72 = vector.broadcast %69 : vector<8x1xf32> to vector<8x8xf32>
    %73 = arith.subf %65, %72 : vector<8x8xf32>
    %74 = math.exp %73 : vector<8x8xf32>
    %c0_41 = arith.constant 0 : index
    %c2_42 = arith.constant 2 : index
    %75 = vector.load %arg10[%c0_41, %c2_42] : memref<8x4xf32, #tpu.memory_space<vmem>>, vector<8x1xf32>
    %76 = arith.mulf %71, %75 : vector<8x1xf32>
    %cst_43 = arith.constant dense<0.000000e+00> : vector<8xf32>
    %77 = vector.multi_reduction <add>, %74, %cst_43 [1] : vector<8x8xf32> to vector<8xf32>
    %78 = vector.shape_cast %77 : vector<8xf32> to vector<8x1xf32>
    %79 = arith.addf %76, %78 : vector<8x1xf32>
    %c0_44 = arith.constant 0 : index
    %c2_45 = arith.constant 2 : index
    %80 = vector.load %arg10[%c0_44, %c2_45] : memref<8x4xf32, #tpu.memory_space<vmem>>, vector<8x1xf32>
    tpu.vector_store %arg10[%c0_44, %c2_45], %79 {strides = array<i32>} : memref<8x4xf32, #tpu.memory_space<vmem>>, vector<8x1xf32>,
    %c0_46 = arith.constant 0 : index
    %c16 = arith.constant 16 : index
    %81 = vector.load %arg11[%c0_46, %c16] : memref<8x32xf32, #tpu.memory_space<vmem>>, vector<8x8xf32>
    %82 = vector.broadcast %71 : vector<8x1xf32> to vector<8x8xf32>
    %83 = arith.mulf %82, %81 : vector<8x8xf32>
    %84 = arith.truncf %74 : vector<8x8xf32> to vector<8x8xbf16>
    %85 = vector.extract_strided_slice %8 {offsets = [0, 16], sizes = [8, 8], strides = [1, 1]} : vector<8x32xbf16> to vector<8x8xbf16>
    %cst_47 = arith.constant dense<0.000000e+00> : vector<8x8xf32>
    %86 = tpu.matmul %84, %85, %cst_47 {dimension_numbers = #tpu.dot_dimension_numbers<[1], [0], [0], [1], [0, 0, 1, 1], [], []>} : vector<8x8xbf16>, vector<8x8xbf16>, vector<8x8xf32> -> vector<8x8xf32>
    %87 = arith.addf %83, %86 : vector<8x8xf32>
    %c0_48 = arith.constant 0 : index
    %c16_49 = arith.constant 16 : index
    %88 = vector.load %arg11[%c0_48, %c16_49] : memref<8x32xf32, #tpu.memory_space<vmem>>, vector<8x8xf32>
    tpu.vector_store %arg11[%c0_48, %c16_49], %87 {strides = array<i32>} : memref<8x32xf32, #tpu.memory_space<vmem>>, vector<8x8xf32>,
    %c0_50 = arith.constant 0 : index
    %c2_51 = arith.constant 2 : index
    %89 = vector.load %arg9[%c0_50, %c2_51] : memref<8x4xf32, #tpu.memory_space<vmem>>, vector<8x1xf32>
    tpu.vector_store %arg9[%c0_50, %c2_51], %69 {strides = array<i32>} : memref<8x4xf32, #tpu.memory_space<vmem>>, vector<8x1xf32>,
    %90 = vector.extract_strided_slice %4 {offsets = [0, 24], sizes = [8, 8], strides = [1, 1]} : vector<8x32xbf16> to vector<8x8xbf16>
    %91 = vector.extract_strided_slice %6 {offsets = [0, 24], sizes = [8, 8], strides = [1, 1]} : vector<8x32xbf16> to vector<8x8xbf16>
    %cst_52 = arith.constant dense<0.000000e+00> : vector<8x8xf32>
    %92 = tpu.matmul %90, %91, %cst_52 {dimension_numbers = #tpu.dot_dimension_numbers<[1], [1], [0], [0], [0, 0, 1, 0], [], []>} : vector<8x8xbf16>, vector<8x8xbf16>, vector<8x8xf32> -> vector<8x8xf32>
    %c0_53 = arith.constant 0 : index
    %c3 = arith.constant 3 : index
    %93 = vector.load %arg9[%c0_53, %c3] : memref<8x4xf32, #tpu.memory_space<vmem>>, vector<8x1xf32>
    %cst_54 = arith.constant dense<0xFF800000> : vector<8xf32>
    %94 = vector.multi_reduction <maximumf>, %92, %cst_54 [1] : vector<8x8xf32> to vector<8xf32>
    %95 = vector.shape_cast %94 : vector<8xf32> to vector<8x1xf32>
    %96 = arith.maximumf %93, %95 : vector<8x1xf32>
    %97 = arith.subf %93, %96 : vector<8x1xf32>
    %98 = math.exp %97 : vector<8x1xf32>
    %99 = vector.broadcast %96 : vector<8x1xf32> to vector<8x8xf32>
    %100 = arith.subf %92, %99 : vector<8x8xf32>
    %101 = math.exp %100 : vector<8x8xf32>
    %c0_55 = arith.constant 0 : index
    %c3_56 = arith.constant 3 : index
    %102 = vector.load %arg10[%c0_55, %c3_56] : memref<8x4xf32, #tpu.memory_space<vmem>>, vector<8x1xf32>
    %103 = arith.mulf %98, %102 : vector<8x1xf32>
    %cst_57 = arith.constant dense<0.000000e+00> : vector<8xf32>
    %104 = vector.multi_reduction <add>, %101, %cst_57 [1] : vector<8x8xf32> to vector<8xf32>
    %105 = vector.shape_cast %104 : vector<8xf32> to vector<8x1xf32>
    %106 = arith.addf %103, %105 : vector<8x1xf32>
    %c0_58 = arith.constant 0 : index
    %c3_59 = arith.constant 3 : index
    %107 = vector.load %arg10[%c0_58, %c3_59] : memref<8x4xf32, #tpu.memory_space<vmem>>, vector<8x1xf32>
    tpu.vector_store %arg10[%c0_58, %c3_59], %106 {strides = array<i32>} : memref<8x4xf32, #tpu.memory_space<vmem>>, vector<8x1xf32>,
    %c0_60 = arith.constant 0 : index
    %c24 = arith.constant 24 : index
    %108 = vector.load %arg11[%c0_60, %c24] : memref<8x32xf32, #tpu.memory_space<vmem>>, vector<8x8xf32>
    %109 = vector.broadcast %98 : vector<8x1xf32> to vector<8x8xf32>
    %110 = arith.mulf %109, %108 : vector<8x8xf32>
    %111 = arith.truncf %101 : vector<8x8xf32> to vector<8x8xbf16>
    %112 = vector.extract_strided_slice %8 {offsets = [0, 24], sizes = [8, 8], strides = [1, 1]} : vector<8x32xbf16> to vector<8x8xbf16>
    %cst_61 = arith.constant dense<0.000000e+00> : vector<8x8xf32>
    %113 = tpu.matmul %111, %112, %cst_61 {dimension_numbers = #tpu.dot_dimension_numbers<[1], [0], [0], [1], [0, 0, 1, 1], [], []>} : vector<8x8xbf16>, vector<8x8xbf16>, vector<8x8xf32> -> vector<8x8xf32>
    %114 = arith.addf %110, %113 : vector<8x8xf32>
    %c0_62 = arith.constant 0 : index
    %c24_63 = arith.constant 24 : index
    %115 = vector.load %arg11[%c0_62, %c24_63] : memref<8x32xf32, #tpu.memory_space<vmem>>, vector<8x8xf32>
    tpu.vector_store %arg11[%c0_62, %c24_63], %114 {strides = array<i32>} : memref<8x32xf32, #tpu.memory_space<vmem>>, vector<8x8xf32>,
    %c0_64 = arith.constant 0 : index
    %c3_65 = arith.constant 3 : index
    %116 = vector.load %arg9[%c0_64, %c3_65] : memref<8x4xf32, #tpu.memory_space<vmem>>, vector<8x1xf32>
    tpu.vector_store %arg9[%c0_64, %c3_65], %96 {strides = array<i32>} : memref<8x4xf32, #tpu.memory_space<vmem>>, vector<8x1xf32>,
    %c0_i32_66 = arith.constant 0 : i32
    %117 = arith.cmpi eq, %arg2, %c0_i32_66 : i32
    %118 = arith.extui %117 : i1 to i32
    %c0_i32_67 = arith.constant 0 : i32
    %119 = arith.cmpi ne, %118, %c0_i32_67 : i32
    scf.if %119 {
      %c0_68 = arith.constant 0 : index
      %c0_69 = arith.constant 0 : index
      %120 = vector.load %arg10[%c0_68, %c0_69] : memref<8x4xf32, #tpu.memory_space<vmem>>, vector<8x1xf32>
      %121 = tpu.reciprocal %120 {approx = true} : vector<8x1xf32> -> vector<8x1xf32>
      %c0_70 = arith.constant 0 : index
      %c0_71 = arith.constant 0 : index
      %122 = vector.load %arg11[%c0_70, %c0_71] : memref<8x32xf32, #tpu.memory_space<vmem>>, vector<8x8xf32>
      %123 = vector.broadcast %121 : vector<8x1xf32> to vector<8x8xf32>
      %124 = arith.mulf %122, %123 : vector<8x8xf32>
      %c0_72 = arith.constant 0 : index
      %c0_73 = arith.constant 0 : index
      %125 = vector.load %arg11[%c0_72, %c0_73] : memref<8x32xf32, #tpu.memory_space<vmem>>, vector<8x8xf32>
      tpu.vector_store %arg11[%c0_72, %c0_73], %124 {strides = array<i32>} : memref<8x32xf32, #tpu.memory_space<vmem>>, vector<8x8xf32>,
      %c0_74 = arith.constant 0 : index
      %c1_75 = arith.constant 1 : index
      %126 = vector.load %arg10[%c0_74, %c1_75] : memref<8x4xf32, #tpu.memory_space<vmem>>, vector<8x1xf32>
      %127 = tpu.reciprocal %126 {approx = true} : vector<8x1xf32> -> vector<8x1xf32>
      %c0_76 = arith.constant 0 : index
      %c8_77 = arith.constant 8 : index
      %128 = vector.load %arg11[%c0_76, %c8_77] : memref<8x32xf32, #tpu.memory_space<vmem>>, vector<8x8xf32>
      %129 = vector.broadcast %127 : vector<8x1xf32> to vector<8x8xf32>
      %130 = arith.mulf %128, %129 : vector<8x8xf32>
      %c0_78 = arith.constant 0 : index
      %c8_79 = arith.constant 8 : index
      %131 = vector.load %arg11[%c0_78, %c8_79] : memref<8x32xf32, #tpu.memory_space<vmem>>, vector<8x8xf32>
      tpu.vector_store %arg11[%c0_78, %c8_79], %130 {strides = array<i32>} : memref<8x32xf32, #tpu.memory_space<vmem>>, vector<8x8xf32>,
      %c0_80 = arith.constant 0 : index
      %c2_81 = arith.constant 2 : index
      %132 = vector.load %arg10[%c0_80, %c2_81] : memref<8x4xf32, #tpu.memory_space<vmem>>, vector<8x1xf32>
      %133 = tpu.reciprocal %132 {approx = true} : vector<8x1xf32> -> vector<8x1xf32>
      %c0_82 = arith.constant 0 : index
      %c16_83 = arith.constant 16 : index
      %134 = vector.load %arg11[%c0_82, %c16_83] : memref<8x32xf32, #tpu.memory_space<vmem>>, vector<8x8xf32>
      %135 = vector.broadcast %133 : vector<8x1xf32> to vector<8x8xf32>
      %136 = arith.mulf %134, %135 : vector<8x8xf32>
      %c0_84 = arith.constant 0 : index
      %c16_85 = arith.constant 16 : index
      %137 = vector.load %arg11[%c0_84, %c16_85] : memref<8x32xf32, #tpu.memory_space<vmem>>, vector<8x8xf32>
      tpu.vector_store %arg11[%c0_84, %c16_85], %136 {strides = array<i32>} : memref<8x32xf32, #tpu.memory_space<vmem>>, vector<8x8xf32>,
      %c0_86 = arith.constant 0 : index
      %c3_87 = arith.constant 3 : index
      %138 = vector.load %arg10[%c0_86, %c3_87] : memref<8x4xf32, #tpu.memory_space<vmem>>, vector<8x1xf32>
      %139 = tpu.reciprocal %138 {approx = true} : vector<8x1xf32> -> vector<8x1xf32>
      %c0_88 = arith.constant 0 : index
      %c24_89 = arith.constant 24 : index
      %140 = vector.load %arg11[%c0_88, %c24_89] : memref<8x32xf32, #tpu.memory_space<vmem>>, vector<8x8xf32>
      %141 = vector.broadcast %139 : vector<8x1xf32> to vector<8x8xf32>
      %142 = arith.mulf %140, %141 : vector<8x8xf32>
      %c0_90 = arith.constant 0 : index
      %c24_91 = arith.constant 24 : index
      %143 = vector.load %arg11[%c0_90, %c24_91] : memref<8x32xf32, #tpu.memory_space<vmem>>, vector<8x8xf32>
      tpu.vector_store %arg11[%c0_90, %c24_91], %142 {strides = array<i32>} : memref<8x32xf32, #tpu.memory_space<vmem>>, vector<8x8xf32>,
      %c0_92 = arith.constant 0 : index
      %c0_93 = arith.constant 0 : index
      %144 = vector.load %arg11[%c0_92, %c0_93] : memref<8x32xf32, #tpu.memory_space<vmem>>, vector<8x32xf32>
      %145 = arith.truncf %144 : vector<8x32xf32> to vector<8x32xbf16>
      %c0_94 = arith.constant 0 : index
      %c0_95 = arith.constant 0 : index
      %146 = vector.load %arg6[%c0_94, %c0_95] : memref<32x32xbf16, #tpu.memory_space<vmem>>, vector<32x32xbf16>
      %cst_96 = arith.constant dense<0.000000e+00> : vector<8x32xf32>
      %147 = tpu.matmul %145, %146, %cst_96 {dimension_numbers = #tpu.dot_dimension_numbers<[1], [0], [0], [1], [0, 0, 1, 1], [], []>} : vector<8x32xbf16>, vector<32x32xbf16>, vector<8x32xf32> -> vector<8x32xf32>
      %c0_97 = arith.constant 0 : index
      %c0_98 = arith.constant 0 : index
      %148 = vector.load %arg7[%c0_97, %c0_98] : memref<1x32xf32, #tpu.memory_space<vmem>>, vector<1x32xf32>
      %149 = vector.broadcast %148 : vector<1x32xf32> to vector<8x32xf32>
      %150 = arith.addf %147, %149 : vector<8x32xf32>
      %c0_99 = arith.constant 0 : index
      %c0_100 = arith.constant 0 : index
      %c0_101 = arith.constant 0 : index
      %151 = vector.load %arg8[%c0_99, %c0_100, %c0_101] : memref<1x8x32xf32, #tpu.memory_space<vmem>>, vector<1x8x32xf32>
      %152 = vector.shape_cast %151 : vector<1x8x32xf32> to vector<8x32xf32>
      %153 = vector.shape_cast %150 : vector<8x32xf32> to vector<1x8x32xf32>
      tpu.vector_store %arg8[%c0_99, %c0_100, %c0_101], %153 {strides = array<i32>} : memref<1x8x32xf32, #tpu.memory_space<vmem>>, vector<1x8x32xf32>,
    } else {
    }
    return
  }
  func.func @transform_0(%arg0: i32, %arg1: i32, %arg2: i32) -> (i32, i32, i32) {
    %c0_i32 = arith.constant 0 : i32
    %c0_i32_0 = arith.constant 0 : i32
    return %arg0, %arg1, %c0_i32 : i32, i32, i32
  }
  func.func @transform_1(%arg0: i32, %arg1: i32, %arg2: i32) -> (i32, i32, i32) {
    %c0_i32 = arith.constant 0 : i32
    %c0_i32_0 = arith.constant 0 : i32
    return %arg0, %arg2, %c0_i32 : i32, i32, i32
  }
  func.func @transform_2(%arg0: i32, %arg1: i32, %arg2: i32) -> (i32, i32, i32) {
    %c0_i32 = arith.constant 0 : i32
    %c0_i32_0 = arith.constant 0 : i32
    return %arg0, %arg2, %c0_i32 : i32, i32, i32
  }
  func.func @transform_3(%arg0: i32, %arg1: i32, %arg2: i32) -> (i32, i32) {
    %c0_i32 = arith.constant 0 : i32
    %c0_i32_0 = arith.constant 0 : i32
    %c0_i32_1 = arith.constant 0 : i32
    return %c0_i32, %c0_i32_0 : i32, i32
  }
  func.func @transform_4(%arg0: i32, %arg1: i32, %arg2: i32) -> (i32, i32) {
    %c0_i32 = arith.constant 0 : i32
    %c0_i32_0 = arith.constant 0 : i32
    %c0_i32_1 = arith.constant 0 : i32
    return %c0_i32, %c0_i32_0 : i32, i32
  }
  func.func @transform_5(%arg0: i32, %arg1: i32, %arg2: i32) -> (i32, i32, i32) {
    %c0_i32 = arith.constant 0 : i32
    %c0_i32_0 = arith.constant 0 : i32
    return %arg0, %arg1, %c0_i32 : i32, i32, i32
  }
}

</mosaic_0001>

<bundles_post_ra>
// kernel: multihead_attention.2
= control target key start
LH: loop header
LB: loop body
LE: loop exit
PB: predicated region body
PF: predicated region fallthrough
CT: control target
= control target key end

     0   :  { %vm53_vm0 = vcmask 261120   ;;  %vm143_vm1 = vcmask 257024   ;;  %s309_s1 = inlined_call_operand.vmem [shape: bf16[32,32], index: 1, kind: input, shape index: {}]   ;;  %s310_s2 = inlined_call_operand.vmem [shape: bf16[32,32], index: 2, kind: input, shape index: {}]   ;;  %s311_s3 = inlined_call_operand.vmem [shape: bf16[32,32], index: 3, kind: input, shape index: {}]   ;;  %s312_s0 = inlined_call_operand.vmem [shape: f32[16,32], index: 0, kind: input, shape index: {}]   ;;  %s313_s4 = inlined_call_operand.vmem [shape: f32[1,32], index: 4, kind: input, shape index: {}]   ;;  %s314_s5 = inlined_call_operand.vmem [shape: f32[1,32], index: 5, kind: input, shape index: {}]   ;;  %s315_s6 = inlined_call_operand.vmem [shape: f32[1,32], index: 6, kind: input, shape index: {}]   ;;  %s316_s8 = inlined_call_operand.vmem [shape: bf16[16,32], index: 8, kind: output, shape index: {1}]   ;;  %s317_s7 = inlined_call_operand.vmem [shape: bf16[16,32], index: 7, kind: output, shape index: {0}]   ;;  %s318_s9 = inlined_call_operand.vmem [shape: bf16[16,32], index: 9, kind: output, shape index: {2}]  }
   0x1   :  { %v194_v0 = vld [vmem:[%s309_s1 + $0x8] sm:$0xff]  ;;  %v193_v3 = vld [vmem:[%s309_s1] sm:$0xff] }
   0x2   :  { %v196_v1 = vld [vmem:[%s310_s2 + $0x8] sm:$0xff]  ;;  %v195_v4 = vld [vmem:[%s310_s2] sm:$0xff]  ;;  %63 = vmatpush.bf16.msra.mxu0 %v194_v0 }
   0x3   :  { %v198_v2 = vld [vmem:[%s311_s3 + $0x8] sm:$0xff]  ;;  %97 = vmatpush.bf16.msra.mxu1 %v196_v1  ;;  %v30_v5 = vld [vmem:[%s312_s0] sm:$0xff] }
   0x4   :  { %v31_v6 = vld [vmem:[%s312_s0 + $0x8] sm:$0xff]  ;;  %131 = vmatpush.bf16.msra.mxu2 %v198_v2  ;;  %v197_v7 = vld [vmem:[%s311_s3] sm:$0xff] }
   0x5   :  { %v32_v8 = vpack.c.bf16 %v31_v6, %v30_v5  ;;  %v199_v9 = vld [vmem:[%s313_s4] ss:$0 sm:$0xff] }
   0x6   :  { %64 = vmatpush.bf16.msra.mxu0 %v193_v3  ;;  %v200_v10 = vld [vmem:[%s314_s5] ss:$0 sm:$0xff] }
   0x7   :  { %98 = vmatpush.bf16.msra.mxu1 %v195_v4  ;;  %v201_v17 = vld [vmem:[%s315_s6] ss:$0 sm:$0xff] }
   0x8   :  { %132 = vmatpush.bf16.msra.mxu2 %v197_v7 }
   0x9   :  { %174 = vmatmul.msk.bf16.vlgmr.msra.gmra.mxu0 %vm53_vm0, %v32_v8 }
   0xa   :  { %183 = vmatmul.msk.bf16.vlgmr.msra.gmra.mxu1 %vm53_vm0, %v32_v8 }
   0xb   :  { %192 = vmatmul.msk.bf16.vlgmr.msra.gmra.mxu2 %vm53_vm0, %v32_v8 }
  0x86   :  { %v66_v11 = vpop.f32.mrf.mxu0 }
  0x87   :  { %v100_v12 = vpop.f32.mrf.mxu1  ;;  %v67_v13 = vadd.f32 %v199_v9, %v66_v11 }
  0x88   :  { %v101_v14 = vadd.f32 %v200_v10, %v100_v12 }
  0x89   :  { %v139_v15 = vmul.f32 0.35355338, %v67_v13 }
  0x8a   :  { %v146_v16 = vpack.c.bf16 %v101_v14, %v101_v14 }
  0x8b   :  { %v141_v18 = vpack.c.bf16 %v139_v15, %v139_v15 }
  0x8c   :  { %148 = vst.msk [vmem:[%s316_s8] sm:$0xf] %vm143_vm1, %v146_v16 }
  0x8d   :  { %144 = vst.msk [vmem:[%s317_s7] sm:$0xf] %vm143_vm1, %v141_v18 }
  0x8e   :  { %v134_v19 = vpop.f32.mrf.mxu2  ;;  %v68_v21 = vpop.f32.mrf.mxu0 }
  0x8f   :  { %v135_v20 = vadd.f32 %v201_v17, %v134_v19  ;;  %v102_v22 = vpop.f32.mrf.mxu1  ;;  %v69_v23 = vadd.f32 %v199_v9, %v68_v21 }
  0x90   :  { %v103_v24 = vadd.f32 %v200_v10, %v102_v22 }
  0x91   :  { %v150_v25 = vpack.c.bf16 %v135_v20, %v135_v20  ;;  %v140_v26 = vmul.f32 0.35355338, %v69_v23 }
  0x92   :  { %v147_v27 = vpack.c.bf16 %v103_v24, %v103_v24 }
  0x93   :  { %152 = vst.msk [vmem:[%s318_s9] sm:$0xf] %vm143_vm1, %v150_v25  ;;  %v142_v28 = vpack.c.bf16 %v140_v26, %v140_v26 }
  0x94   :  { %149 = vst.msk [vmem:[%s316_s8 + $0x4] sm:$0xf] %vm143_vm1, %v147_v27 }
  0x95   :  { %145 = vst.msk [vmem:[%s317_s7 + $0x4] sm:$0xf] %vm143_vm1, %v142_v28 }
  0x96   :  { %v136_v29 = vpop.f32.mrf.mxu2 }
  0x97   :  { %v137_v30 = vadd.f32 %v201_v17, %v136_v29 }
  0x99   :  { %v151_v31 = vpack.c.bf16 %v137_v30, %v137_v30 }
  0x9b   :  { %153 = vst.msk [vmem:[%s318_s9 + $0x4] sm:$0xf] %vm143_vm1, %v151_v31 }

// kernel: multihead_attention.3
= control target key start
LH: loop header
LB: loop body
LE: loop exit
PB: predicated region body
PF: predicated region fallthrough
CT: control target
= control target key end

     0   :  { %10 = vsyncpa [#allocation6], 0  ;;  %s1331_s0 = inlined_call_operand.vmem [shape: bf16[2,8,32], index: 0, kind: input, shape index: {}]   ;;  %s1332_s1 = inlined_call_operand.vmem [shape: bf16[2,8,32], index: 1, kind: input, shape index: {}]   ;;  %s1333_s2 = inlined_call_operand.vmem [shape: bf16[2,8,32], index: 2, kind: input, shape index: {}]   ;;  %s1334_s3 = inlined_call_operand.vmem [shape: bf16[32,32], index: 3, kind: input, shape index: {}]   ;;  %s1335_s4 = inlined_call_operand.vmem [shape: f32[1,32], index: 4, kind: input, shape index: {}]   ;;  %s1336_s5 = inlined_call_operand.hbm [shape: f32[2,8,32], index: 5, kind: output, shape index: {}]  }
   0x1   :  { %12 = vsyncpa [#allocation6 + $0x1], 0  ;;  %s1113_s18 = smov 0   ;;  %s1115_s19 = smov 0  }
   0x2   :  { %s1117_s20 = smov 0   ;;  %s1119_s21 = smov 0  }
   0x3   :  { %s1121_s22 = smov 0   ;;  %s1123_s23 = smov 0  }
   0x4 LB: > { %s861_s24 = sadd.s32 4294967295, %s1069_s23   ;;  %s862_s25 = sadd.s32 4294967294, %s1069_s23   ;;  %s1069_s23 = sphi %s1123_s23, %s18_s23   ;;  %s1065_s22 = sphi %s1121_s22, %s1343_s22   ;;  %s1061_s21 = sphi %s1119_s21, %s1342_s21   ;;  %s1057_s20 = sphi %s1117_s20, %s1341_s20   ;;  %s1053_s19 = sphi %s1115_s19, %s1340_s19   ;;  %s1049_s18 = sphi %s1113_s18, %s1339_s18  }
   0x5   : > { %s37_s26 = sadd.s32 1, %s1065_s22  ;;  %s172_s27 = sadd.s32 1, %s1057_s20 }
   0x6   : > { %p39_p0 = scmp.ge.s32.totalorder %s37_s26, 2  ;;  %p182_p1 = scmp.ne.s32.totalorder %s1057_s20, %s1053_s19 }
   0x7   : > { %p183_p2 = scmp.eq.s32.totalorder %s861_s24, 1  ;;  %p188_p3 = scmp.ne.s32.totalorder %s1053_s19, %s1049_s18 }
   0x8   : > { %s1345_s26 = smov (%p39_p0, %s37_s26), 0  ;;  %p189_p5 = scmp.eq.s32.totalorder %s862_s25, 1 }
   0x9   : > { %p1153_p4 = por %p183_p2, %p182_p1  ;;  %s167_s29 = ssub.s32 %s1065_s22, %s1345_s26 }
   0xa   : > { %p865_p6 = scmp.ge.s32.totalorder %s1069_s23, 1  ;;  %p170_p7 = scmp.eq.s32.totalorder %s167_s29, 0 }
   0xb   : > { %p1160_p8 = por %p189_p5, %p188_p3  ;;  %p243_p9 = scmp.lt.s32.totalorder %s1069_s23, 3 }
   0xc   : > { %s1166_s6 = scalar_select %p170_p7, %s1057_s20, %s172_s27  }
   0xd   : > { %p244_p10 = pnand %p865_p6, %p243_p9 }
   0xe   : > { %p287_p11 = scmp.lt.s32.totalorder (!%p244_p10), %s1061_s21, 1  ;;  %s1072_s15 = smov (!%p244_p10), 112  }
   0xf   : > { %247 = sbr.rel (%p244_p10) target bundleno = 1240 (0x4d8), region = 40  ;;  %s1073_s16 = smov (!%p244_p10), 120  }
  0x10   : > { %s1074_s17 = smov (!%p244_p10), 104   ;;  %s1080_s29 = smov (!%p244_p10), 8  }
  0x11   : > { %s284_s13 = sand.u32 (!%p244_p10), 1, %s1053_s19  }
  0x14   : > { %s288_s7 = scalar_select %p287_p11, %s1061_s21, 1  ;;  %vm321_vm0 = vcmask 64512   ;;  %vm313_vm1 = vcmask 31744   ;;  %v1071_v3 = vmov -inf   ;;  %v1075_v11 = vmov 0  }
  0x15   : > { %314 = vst.msk [vmem:[#allocation2] sm:$0xff] %vm313_vm1, %v1071_v3  ;;  %960 = vset.pattern.permute.xlu1 %v1075_v11  ;;  %v1076_v12 = vmov 0.0   ;;  %vm363_vm2 = vcmask 7168   ;;  %vm376_vm3 = vcmask 1043456   ;;  %v1077_v46 = vmov 1  }
  0x16   : > { %s1170_s8 = sshll.u32 %s288_s7, 2  ;;  %315 = vst.msk [vmem:[#allocation3] sm:$0xff] %vm313_vm1, %v1076_v12  ;;  %961 = vset.pattern.permute.xlu2 %v1077_v46  ;;  %v1078_v47 = vmov 2   ;;  %v1079_v48 = vmov 3   ;;  %vm447_vm4 = vcmask 15368   ;;  %vm534_vm5 = vcmask 23568  }
  0x17   : > { %s300_s11 = scalar_lea.vmem %s1332_s1, %s1170_s8  ;;  %s293_s14 = scalar_lea.vmem %s1331_s0, %s1170_s8  ;;  %962 = vset.pattern.permute.xlu0 %v1078_v47  ;;  %vm618_vm6 = vcmask 31768   ;;  %vm316_vm7 = vcmask 261120   ;;  %vm486_vm8 = vcmask 130112   ;;  %vm570_vm9 = vcmask 195712  }
  0x18   : > { %v319_v0 = vld [vmem:[%s300_s11] sm:$0xf]  ;;  %s307_s27 = scalar_lea.vmem %s1333_s2, %s1170_s8  ;;  %317 = vst.msk [vmem:[#allocation4] sm:$0xff] %vm316_vm7, %v1076_v12  ;;  %s1081_s7 = smov 16   ;;  %vm654_vm10 = vcmask 261312  }
  0x19   : > { %v326_v1 = vsel %vm321_vm0, %v319_v0, 0  ;;  %v318_v2 = vld [vmem:[%s293_s14] sm:$0xf]  ;;  %v402_v6 = vunpack.c.l.b16 %v319_v0  ;;  %s1082_s8 = smov 24   ;;  %s888_s14 = sshll.u32 %s1061_s21, 3 }
  0x1a   : > { %335 = vmatpush.bf16.xpose.msra.mxu0 %v326_v1  ;;  %v397_v9 = vunpack.c.l.b16 %v318_v2  ;;  %v320_v19 = vld [vmem:[%s307_s27] sm:$0xf]  ;;  %s752_s24 = scalar_lea.hbm %s1336_s5, %s888_s14  ;;  %s741_s21 = scalar_lea.sflag [#allocation6], %s284_s13 }
  0x1b   : > { %v403_v7 = vpack.c.b16 %v402_v6, %v402_v6  ;;  %v378_v20 = vsel %vm376_vm3, %v320_v19, 0  ;;  %v458_v43 = vunpack.c.l.b16 %v320_v19  ;;  %s1011_s14 = scalar_lea.hbm %s1336_s5, 16 }
  0x1c   : > { %v398_v10 = vpack.c.b16 %v397_v9, %v397_v9  ;;  %v1191_v13 = vld [vmem:[#allocation2] sm:$0xff]  ;;  %387 = vmatpush.bf16.msra.mxu1 %v378_v20 }
  0x1d   : > { %491 = vrot.lane.b32.xlu2 %v403_v7, %s1072_s15  ;;  %v459_v44 = vpack.c.b16 %v458_v43, %v458_v43 }
  0x21   : > { %870 = vmatmul.msk.bf16.vlgmr.msra.gmra.mxu0 %vm321_vm0, %v318_v2 }
  0x25   : > { %489 = vrot.lane.b32.xlu2 %v398_v10, %s1072_s15 }
  0x2d   : > { %573 = vrot.lane.b32.xlu2 %v398_v10, %s1074_s17 }
  0x77   : > { %v492_v21 = vpop.permute.xlu2 %491 }
  0x78   : > { %v497_v22 = vsel %vm321_vm0, %v492_v21, 0 }
  0x79   : > { %506 = vmatpush.bf16.xpose.msrb.mxu1 %v497_v22 }
  0x7f   : > { %v490_v29 = vpop.permute.xlu2 %489 }
  0x87   : > { %v574_v32 = vpop.permute.xlu2 %573 }
  0x9e   : > { %v337_v4 = vpop.f32.mrf.mxu0 }
  0x9f   : > { %v342_v5 = vsel %vm321_vm0, %v337_v4, -inf }
  0xa0   : > { %343 = vmax.xlane.f32.xlu0 %v342_v5 }
  0xa6   : > { %v339_v8 = vpop.f32.mrf.mxu0 }
  0xb4   : > { %404 = vrot.lane.b32.xlu0 %v403_v7, %s1073_s16 }
 0x113   : > { %v344_v14 = vpop.xlane.xlu0 %343 }
 0x114   : > { %v1194_v15 = vmax.f32 %v1191_v13, %v344_v14 }
 0x116   : > { %v346_v16 = vsub.f32 %v1191_v13, %v1194_v15  ;;  %395 = vst.msk [vmem:[#allocation2] sm:$0xff] %vm363_vm2, %v1194_v15  ;;  %351 = vperm.xlu1 %960, %v1194_v15  }
 0x11d   : > { %v1229_v49 = vld [vmem:[#allocation2] sm:$0xff] }
 0x11e   : > { %399 = vrot.lane.b32.xlu1 %v398_v10, %s1073_s16  ;;  %v347_v10 = vmul.f32 1.442695, %v346_v16 }
 0x11f   : > { %963 = vset.pattern.permute.xlu1 %v1079_v48 }
 0x126   : > { %575 = vrot.lane.b32.xlu1 %v403_v7, %s1074_s17  ;;  %v405_v17 = vpop.permute.xlu0 %404 }
 0x127   : > { %v410_v18 = vsel %vm321_vm0, %v405_v17, 0 }
 0x128   : > { %419 = vmatpush.bf16.xpose.msra.mxu2 %v410_v18 }
 0x188   : > { %v352_v23 = vpop.permute.xlu1 %351 }
 0x189   : > { %v354_v24 = vsub.f32 %v337_v4, %v352_v23 }
 0x18b   : > { %v355_v25 = vmul.f32 1.442695, %v354_v24 }
 0x18d   : > { %973 = vpow2.f32 %v355_v25 }
 0x190   : > { %v400_v26 = vpop.permute.xlu1 %399 }
 0x191   : > { %872 = vmatmul.msk.bf16.vlgmr.msra.gmra.mxu2 %vm321_vm0, %v400_v26 }
 0x193   : > { %v974_v27 = vpop.eup %973 }
 0x194   : > { %v372_v28 = vpack.c.bf16 %v974_v27, %v974_v27  ;;  %v359_v63 = vsel %vm321_vm0, %v974_v27, 0.0 }
 0x196   : > { %871 = vmatmul.msk.bf16.vlgmr.msra.gmra.mxu1 %vm321_vm0, %v372_v28 }
 0x198   : > { %v576_v30 = vpop.permute.xlu1 %575 }
 0x199   : > { %v581_v31 = vsel %vm321_vm0, %v576_v30, 0  ;;  %v357_v30 = vld [vmem:[#allocation3] sm:$0xff] }
 0x19a   : > { %590 = vmatpush.bf16.xpose.msrb.mxu0 %v581_v31 }
 0x1a1   : > { %876 = vmatmul.msk.bf16.vlgmr.msrb.gmra.mxu0 %vm321_vm0, %v574_v32 }
 0x1a6   : > { %874 = vmatmul.msk.bf16.vlgmr.msrb.gmra.mxu1 %vm321_vm0, %v490_v29 }
 0x213   : > { %v1215_v33 = vpop.f32.mrf.mxu1 }
 0x214   : > { %v421_v34 = vpop.f32.mrf.mxu2 }
 0x215   : > { %v426_v35 = vsel %vm321_vm0, %v421_v34, -inf }
 0x216   : > { %427 = vmax.xlane.f32.xlu1 %v426_v35 }
 0x21b   : > { %v391_v36 = vpop.f32.mrf.mxu1 }
 0x21c   : > { %v423_v37 = vpop.f32.mrf.mxu2 }
 0x21e   : > { %v1218_v38 = vpop.f32.mrf.mxu0 }
 0x21f   : > { %v597_v39 = vsel %vm321_vm0, %v1218_v38, -inf }
 0x220   : > { %598 = vmax.xlane.f32.xlu0 %v597_v39 }
 0x223   : > { %v1222_v40 = vpop.f32.mrf.mxu1 }
 0x224   : > { %v513_v41 = vsel %vm321_vm0, %v1222_v40, -inf }
 0x225   : > { %514 = vmax.xlane.f32.xlu2 %v513_v41 }
 0x226   : > { %v594_v42 = vpop.f32.mrf.mxu0 }
 0x22b   : > { %v510_v45 = vpop.f32.mrf.mxu1 }
 0x22f   : > { %460 = vrot.lane.b32.xlu1 %v459_v44, %s1073_s16 }
 0x289   : > { %v428_v50 = vpop.xlane.xlu1 %427 }
 0x28a   : > { %v1232_v51 = vmax.f32 %v1229_v49, %v428_v50 }
 0x28c   : > { %v430_v52 = vsub.f32 %v1229_v49, %v1232_v51  ;;  %488 = vst.msk [vmem:[#allocation2] sm:$0xff] %vm447_vm4, %v1232_v51  ;;  %435 = vperm.xlu2 %961, %v1232_v51  }
 0x28e   : > { %v431_v27 = vmul.f32 1.442695, %v430_v52 }
 0x293   : > { %v512_v54 = vld [vmem:[#allocation2] sm:$0xff]  ;;  %v599_v57 = vpop.xlane.xlu0 %598 }
 0x294   : > { %544 = vrot.lane.b32.xlu2 %v459_v44, %s1072_s15  ;;  %s866_s15 = sshll.u32 %s284_s13, 3 }
 0x295   : > { %964 = vset.pattern.permute.xlu2 %v1075_v11 }
 0x298   : > { %v515_v53 = vpop.xlane.xlu2 %514 }
 0x299   : > { %v516_v55 = vmax.f32 %v512_v54, %v515_v53 }
 0x29b   : > { %v517_v56 = vsub.f32 %v512_v54, %v516_v55  ;;  %572 = vst.msk [vmem:[#allocation2] sm:$0xff] %vm534_vm5, %v516_v55  ;;  %522 = vperm.xlu0 %962, %v516_v55  }
 0x29c   : > { %628 = vrot.lane.b32.xlu2 %v459_v44, %s1074_s17 }
 0x2a1   : > { %v461_v61 = vpop.permute.xlu1 %460 }
 0x2a2   : > { %v596_v58 = vld [vmem:[#allocation2] sm:$0xff]  ;;  %v466_v62 = vsel %vm376_vm3, %v461_v61, 0 }
 0x2a3   : > { %v600_v59 = vmax.f32 %v596_v58, %v599_v57  ;;  %968 = vset.pattern.permute.xlu0 %v1075_v11  ;;  %475 = vmatpush.bf16.msra.mxu3 %v466_v62  ;;  %v518_v11 = vmul.f32 1.442695, %v517_v56 }
 0x2a5   : > { %v601_v60 = vsub.f32 %v596_v58, %v600_v59  ;;  %656 = vst.msk [vmem:[#allocation2] sm:$0xff] %vm618_vm6, %v600_v59  ;;  %606 = vperm.xlu1 %963, %v600_v59  }
 0x2a7   : > { %v602_v28 = vmul.f32 1.442695, %v601_v60 }
 0x2ad   : > { %965 = vset.pattern.permute.xlu1 %v1077_v46 }
 0x2cf   : > { %360 = vadd.xlane.f32.xlu1 %v359_v63 }
 0x2e6   : > { %v436_v0 = vpop.permute.xlu2 %435 }
 0x2e7   : > { %v438_v1 = vsub.f32 %v421_v34, %v436_v0 }
 0x2e9   : > { %v439_v2 = vmul.f32 1.442695, %v438_v1 }
 0x2eb   : > { %975 = vpow2.f32 %v439_v2 }
 0x2ec   : > { %977 = vpow2.f32 %v347_v10 }
 0x2ed   : > { %979 = vpow2.f32 %v518_v11 }
 0x2ee   : > { %v545_v3 = vpop.permute.xlu2 %544 }
 0x2ef   : > { %v550_v4 = vsel %vm376_vm3, %v545_v3, 0 }
 0x2f0   : > { %559 = vmatpush.bf16.msrb.mxu3 %v550_v4 }
 0x2f1   : > { %v976_v5 = vpop.eup %975 }
 0x2f2   : > { %v443_v6 = vsel %vm321_vm0, %v976_v5, 0.0  ;;  %v456_v7 = vpack.c.bf16 %v976_v5, %v976_v5  ;;  %v978_v14 = vpop.eup %977 }
 0x2f3   : > { %444 = vadd.xlane.f32.xlu2 %v443_v6  ;;  %v980_v20 = vpop.eup %979  ;;  %v358_v31 = vmul.f32 %v978_v14, %v357_v30 }
 0x2f4   : > { %873 = vmatmul.msk.bf16.vlgmr.msra.gmra.mxu3 %vm321_vm0, %v456_v7 }
 0x2f6   : > { %v629_v8 = vpop.permute.xlu2 %628 }
 0x2f7   : > { %v634_v9 = vsel %vm376_vm3, %v629_v8, 0 }
 0x2f8   : > { %643 = vmatpush.bf16.msrb.mxu2 %v634_v9 }
 0x30b   : > { %368 = vperm.xlu2 %964, %v978_v14   ;;  %v892_v14 = vld [vmem:[%s1334_s3 + $0x8] sm:$0xff] }
 0x30c   : > { %732 = vmatpush.bf16.msra.mxu1 %v892_v14 }
 0x30d   : > { %v523_v17 = vpop.permute.xlu0 %522 }
 0x30e   : > { %v525_v18 = vsub.f32 %v1222_v40, %v523_v17  ;;  %v365_v40 = vld [vmem:[#allocation4] sm:$0xff]  ;;  %v891_v17 = vld [vmem:[%s1334_s3] sm:$0xff] }
 0x310   : > { %v526_v19 = vmul.f32 1.442695, %v525_v18  ;;  %733 = vmatpush.bf16.msra.mxu1 %v891_v17 }
 0x312   : > { %981 = vpow2.f32 %v526_v19 }
 0x313   : > { %966 = vset.pattern.permute.xlu2 %v1078_v47 }
 0x314   : > { %539 = vperm.xlu2 %966, %v980_v20  }
 0x317   : > { %v607_v21 = vpop.permute.xlu1 %606 }
 0x318   : > { %v982_v22 = vpop.eup %981  ;;  %v609_v23 = vsub.f32 %v1218_v38, %v607_v21 }
 0x319   : > { %v530_v13 = vsel %vm321_vm0, %v982_v22, 0.0  ;;  %v543_v15 = vpack.c.bf16 %v982_v22, %v982_v22 }
 0x31a   : > { %v610_v16 = vmul.f32 1.442695, %v609_v23  ;;  %531 = vadd.xlane.f32.xlu0 %v530_v13 }
 0x31b   : > { %875 = vmatmul.msk.bf16.vlgmr.msrb.gmra.mxu3 %vm321_vm0, %v543_v15 }
 0x31c   : > { %983 = vpow2.f32 %v610_v16 }
 0x31d   : > { %985 = vpow2.f32 %v431_v27 }
 0x31e   : > { %987 = vpow2.f32 %v602_v28 }
 0x322   : > { %v984_v24 = vpop.eup %983 }
 0x323   : > { %v614_v25 = vsel %vm321_vm0, %v984_v24, 0.0  ;;  %v627_v26 = vpack.c.bf16 %v984_v24, %v984_v24  ;;  %v986_v29 = vpop.eup %985 }
 0x324   : > { %615 = vadd.xlane.f32.xlu1 %v614_v25  ;;  %v988_v35 = vpop.eup %987 }
 0x325   : > { %877 = vmatmul.msk.bf16.vlgmr.msrb.gmra.mxu2 %vm321_vm0, %v627_v26  ;;  %v972_v26 = vld [vmem:[%s1335_s4] ss:$0 sm:$0xff] }
 0x33d   : > { %452 = vperm.xlu1 %965, %v986_v29  }
 0x342   : > { %v361_v32 = vpop.xlane.xlu1 %360 }
 0x343   : > { %v362_v34 = vadd.f32 %v361_v32, %v358_v31 }
 0x345   : > { %364 = vst.msk [vmem:[#allocation3] sm:$0xff] %vm363_vm2, %v362_v34  ;;  %967 = vset.pattern.permute.xlu1 %v1079_v48 }
 0x346   : > { %623 = vperm.xlu1 %967, %v988_v35  }
 0x34c   : > { %v441_v36 = vld [vmem:[#allocation3] sm:$0xff] }
 0x34d   : > { %v442_v37 = vmul.f32 %v986_v29, %v441_v36 }
 0x34e   : > { %969 = vset.pattern.permute.xlu1 %v1077_v46 }
 0x366   : > { %v445_v38 = vpop.xlane.xlu2 %444 }
 0x367   : > { %v446_v39 = vadd.f32 %v445_v38, %v442_v37 }
 0x369   : > { %448 = vst.msk [vmem:[#allocation3] sm:$0xff] %vm447_vm4, %v446_v39 }
 0x36e   : > { %v369_v41 = vpop.permute.xlu2 %368 }
 0x36f   : > { %v371_v42 = vmul.f32 %v369_v41, %v365_v40 }
 0x370   : > { %v528_v12 = vld [vmem:[#allocation3] sm:$0xff] }
 0x371   : > { %v393_v43 = vadd.f32 %v1215_v33, %v371_v42  ;;  %v529_v47 = vmul.f32 %v980_v20, %v528_v12 }
 0x373   : > { %394 = vst.msk [vmem:[#allocation4] sm:$0xff] %vm321_vm0, %v393_v43 }
 0x376   : > { %v540_v1 = vpop.permute.xlu2 %539 }
 0x377   : > { %v477_v44 = vpop.f32.mrf.mxu3 }
 0x378   : > { %482 = vrot.lane.b32.xlu0 %v477_v44, %s1080_s29  ;;  %s286_s29 = scalar_lea.vmem [#allocation5], %s866_s15 }
 0x37a   : > { %v449_v60 = vld [vmem:[#allocation4] sm:$0xff] }
 0x37f   : > { %v479_v45 = vpop.f32.mrf.mxu3 }
 0x38d   : > { %v532_v46 = vpop.xlane.xlu0 %531 }
 0x38e   : > { %v533_v49 = vadd.f32 %v532_v46, %v529_v47 }
 0x390   : > { %535 = vst.msk [vmem:[#allocation3] sm:$0xff] %vm534_vm5, %v533_v49 }
 0x397   : > { %v612_v50 = vld [vmem:[#allocation3] sm:$0xff]  ;;  %v616_v52 = vpop.xlane.xlu1 %615 }
 0x398   : > { %v613_v51 = vmul.f32 %v988_v35, %v612_v50 }
 0x39a   : > { %v617_v53 = vadd.f32 %v616_v52, %v613_v51 }
 0x39c   : > { %619 = vst.msk [vmem:[#allocation3] sm:$0xff] %vm618_vm6, %v617_v53 }
 0x39e   : > { %v561_v54 = vpop.f32.mrf.mxu3 }
 0x39f   : > { %566 = vrot.lane.b32.xlu0 %v561_v54, %s1081_s7  ;;  %s754_s7 = sshll.u32 %s286_s29, 4  ;;  %s755_s7 = int_to_ptr.vmem [resolvable:$true] %s754_s7 }
 0x3a3   : > { %v670_v33 = vld [vmem:[#allocation3] sm:$0xff] }
 0x3a4   : > { %989 = vrcp.f32 %v670_v33 }
 0x3a6   : > { %v563_v55 = vpop.f32.mrf.mxu3 }
 0x3a8   : > { %v645_v56 = vpop.f32.mrf.mxu2 }
 0x3a9   : > { %650 = vrot.lane.b32.xlu2 %v645_v56, %s1082_s8  ;;  %s756_s8 = sshll.u32 %s752_s24, 4  ;;  %s757_s8 = int_to_ptr.hbm [resolvable:$true] %s756_s8 }
 0x3aa   : > { %v990_v57 = vpop.eup %989  ;;  %s1005_s9 = sshra.s32 %s757_s8, 4  ;;  %s1006_s9 = int_to_ptr.hbm [resolvable:$true] %s1005_s9 }
 0x3ab   : > { %675 = vperm.xlu1 %969, %v990_v57   ;;  %665 = vperm.xlu0 %968, %v990_v57   ;;  %s1007_s10 = scalar_lea.hbm %s1006_s9, 8  ;;  %p1012_p1 = scmp.lt.s32.totalorder %s1006_s9, %s1336_s5 }
 0x3ac   : > { %p1008_p12 = scmp.ne.s32.totalorder %s1006_s9, %s1007_s10  ;;  %p1013_p2 = scmp.lt.s32.totalorder %s1011_s14, %s1007_s10 }
 0x3ae   : > { %p1009_p13 = pnand %p1008_p12, %p1153_p4  ;;  %p1014_p3 = por %p1013_p2, %p1012_p1 }
 0x3af   : > { %v453_v59 = vpop.permute.xlu1 %452 }
 0x3b0   : > { %v647_v58 = vpop.f32.mrf.mxu2  ;;  %v455_v61 = vmul.f32 %v453_v59, %v449_v60  ;;  %p1010_p0 = pneg %p1009_p13 }
 0x3b1   : > { %685 = vperm.xlu2 %966, %v990_v57  }
 0x3b2   : > { %p1015_p5 = pnand %p1014_p3, %p1010_p0 }
 0x3b3   : > { %970 = vset.pattern.permute.xlu1 %v1079_v48  ;;  %971 = vset.pattern.permute.xlu0 %v1079_v48 }
 0x3b4   : > { %695 = vperm.xlu1 %970, %v990_v57  }
 0x3b8   : > { %v624_v5 = vpop.permute.xlu1 %623 }
 0x3ea   : > { %v483_v62 = vpop.permute.xlu0 %482 }
 0x3eb   : > { %v485_v63 = vadd.f32 %v483_v62, %v455_v61 }
 0x3ed   : > { %487 = vst.msk [vmem:[#allocation4] sm:$0xff] %vm486_vm8, %v485_v63 }
 0x3f4   : > { %v536_v0 = vld [vmem:[#allocation4] sm:$0xff] }
 0x3f5   : > { %v542_v2 = vmul.f32 %v540_v1, %v536_v0 }
 0x403   : > { %v651_v7 = vpop.permute.xlu2 %650 }
 0x40b   : > { %v686_v21 = vpop.permute.xlu2 %685 }
 0x411   : > { %v567_v3 = vpop.permute.xlu0 %566 }
 0x412   : > { %v569_v4 = vadd.f32 %v567_v3, %v542_v2 }
 0x414   : > { %571 = vst.msk [vmem:[#allocation4] sm:$0xff] %vm570_vm9, %v569_v4 }
 0x41b   : > { %v620_v6 = vld [vmem:[#allocation4] sm:$0xff] }
 0x41c   : > { %v626_v48 = vmul.f32 %v624_v5, %v620_v6 }
 0x41d   : > { %v666_v10 = vpop.permute.xlu0 %665  ;;  %v676_v18 = vpop.permute.xlu1 %675 }
 0x41e   : > { %v653_v8 = vadd.f32 %v651_v7, %v626_v48 }
 0x420   : > { %655 = vst.msk [vmem:[#allocation4] sm:$0xff] %vm654_vm10, %v653_v8 }
 0x426   : > { %v696_v13 = vpop.permute.xlu1 %695 }
 0x427   : > { %v662_v9 = vld [vmem:[#allocation4] sm:$0xff] }
 0x428   : > { %v668_v11 = vmul.f32 %v666_v10, %v662_v9 }
 0x42a   : > { %669 = vst.msk [vmem:[#allocation4] sm:$0xff] %vm321_vm0, %v668_v11 }
 0x431   : > { %v672_v19 = vld [vmem:[#allocation4] sm:$0xff] }
 0x432   : > { %v678_v20 = vmul.f32 %v676_v18, %v672_v19 }
 0x434   : > { %679 = vst.msk [vmem:[#allocation4] sm:$0xff] %vm486_vm8, %v678_v20 }
 0x43b   : > { %v682_v22 = vld [vmem:[#allocation4] sm:$0xff] }
 0x43c   : > { %v688_v23 = vmul.f32 %v686_v21, %v682_v22 }
 0x43e   : > { %689 = vst.msk [vmem:[#allocation4] sm:$0xff] %vm570_vm9, %v688_v23 }
 0x445   : > { %v692_v15 = vld [vmem:[#allocation4] sm:$0xff] }
 0x446   : > { %v698_v16 = vmul.f32 %v696_v13, %v692_v15 }
 0x448   : > { %699 = vst.msk [vmem:[#allocation4] sm:$0xff] %vm654_vm10, %v698_v16 }
 0x44f   : > { %v700_v24 = vld [vmem:[#allocation4] sm:$0xff] }
 0x450   : > { %v701_v25 = vpack.c.bf16 %v700_v24, %v700_v24 }
 0x452   : > { %886 = vmatmul.msk.bf16.vlgmr.msra.gmra.mxu1 %vm316_vm7, %v701_v25 }
 0x4cf   : > { %v735_v27 = vpop.f32.mrf.mxu1 }
 0x4d0   : > { %v736_v28 = vadd.f32 %v972_v26, %v735_v27 }
 0x4d2   : > { %739 = vst.msk [vmem:[%s286_s29] sm:$0xff] %vm316_vm7, %v736_v28 }
 0x4d3   : > { %1018 = shalt.err (!%p1015_p5)
}
 0x4d4   : > { %893 = dma.vmem_to_hbm [thread:$0]  (%p1153_p4), %s755_s7, 128, %s757_s8, %s741_s21  }
 0x4d7   : > { %v737_v29 = vpop.f32.mrf.mxu1 }
 0x4d8 PF: > { %p899_p6 = scmp.ge.s32.totalorder %s1069_s23, 2  ;;  %s768_s13 = sand.u32 1, %s1049_s18  }
 0x4d9   : > { %s769_s17 = scalar_lea.sflag [#allocation6], %s768_s13 }
 0x4da   : > { %p896_p7 = pnand %p899_p6, %p1160_p8 }
 0x4dc   : > { %p897_p9 = pneg %p896_p7 }
 0x4de   : > { %1044 = dma.done.wait (%p897_p9), %s769_s17, 128  }
 0x4df   : > { %1046 = vsyncadd (%p897_p9), %s769_s17, 4294967168  ;;  %s18_s23 = sadd.s32 1, %s1069_s23   ;;  %s1339_s18 = smov %s1053_s19 }
 0x4e0   : > { %p15_p10 = scmp.ge.s32.totalorder %s18_s23, 4   ;;  %s1340_s19 = smov %s1057_s20 }
 0x4e1   : > { %s1341_s20 = smov %s1166_s6  ;;  %s1342_s21 = smov %s1065_s22 }
 0x4e2   : > { %s1343_s22 = smov %s1345_s26  ;;  %17 = sbr.rel (!%p15_p10) target bundleno = 4 (0x4), region = 89 }
 0x4e7   :  { %775 = vsyncpa [#allocation6], 1 }
 0x4e8   :  { %777 = vsyncpa [#allocation6 + $0x1], 1 }

</bundles_post_ra>
